<compile_context>
chip_gen: v7x
topology: tpu7x:2x2x1
jax: 0.10.0
libtpu: 0.0.40
codegen_flags: <defaults>
</compile_context>

<pallas_src>
import jax
import jax.numpy as jnp
from jax.experimental import pallas as pl
from jax.experimental.pallas import tpu as pltpu

_LANE = 128
_SUBLANE = 8


def _round_up(n, m):
    return ((n + m - 1) // m) * m


def _vmem_capacity_bytes(default=64 * 1024 * 1024):
    """Per-core VMEM capacity; conservative default if the query fails."""
    try:
        info = pltpu.get_tpu_info()
        return int(getattr(info, "vmem_capacity_bytes", default))
    except Exception:
        return default


# --------------------------------------------------------------------------
# Kernels
# --------------------------------------------------------------------------
def _make_fused_kernel(out_cols):
    """relu( relu(x @ W1 + b1) @ W2 + b2 ) on one batch tile; whole hidden resident."""

    def kernel(x_ref, w1_ref, b1_ref, w2_ref, b2_ref, o_ref):
        x = x_ref[...].astype(w1_ref.dtype)                               # in-kernel cast (VPU)
        h = jnp.dot(x, w1_ref[...], preferred_element_type=jnp.float32)  # MXU, f32 acc
        h = jnp.maximum(h + b1_ref[...], 0.0)                            # f32 bias + ReLU
        y = jnp.dot(h.astype(w2_ref.dtype), w2_ref[...],
                    preferred_element_type=jnp.float32)                  # MXU, f32 acc
        y = jnp.maximum(y + b2_ref[...], 0.0)                            # outer ReLU (f32)
        if out_cols != y.shape[1]:
            y = y[:, :out_cols]                                          # drop padded lanes in-register
        o_ref[...] = y.astype(o_ref.dtype)

    return kernel


def _make_hidden_tiled_kernel(out_cols):
    """Same op with the hidden dim tiled over grid axis 1 (f32 accumulator scratch)."""

    def kernel(x_ref, w1_ref, b1_ref, w2_ref, b2_ref, o_ref, acc_ref):
        k = pl.program_id(1)

        @pl.when(k == 0)
        def _init():
            acc_ref[...] = jnp.zeros_like(acc_ref)

        x = x_ref[...].astype(w1_ref.dtype)
        h = jnp.dot(x, w1_ref[...], preferred_element_type=jnp.float32)
        h = jnp.maximum(h + b1_ref[...], 0.0)           # ReLU is per-element -> chunkable
        acc_ref[...] += jnp.dot(h.astype(w2_ref.dtype), w2_ref[...],
                                preferred_element_type=jnp.float32)

        @pl.when(k == pl.num_programs(1) - 1)
        def _finish():
            y = jnp.maximum(acc_ref[...] + b2_ref[...], 0.0)
            if out_cols != acc_ref.shape[1]:
                y = y[:, :out_cols]
            o_ref[...] = y.astype(o_ref.dtype)

    return kernel


# --------------------------------------------------------------------------
# Parameter prep (one-time, outside the hot path)
# --------------------------------------------------------------------------
def prepare_params(w1, b1, w2, b2, compute_dtype=jnp.float32):
    """PyTorch layout in: w1 (hidden, in_dim), w2 (out_dim, hidden).
    Out: (in_dim, hidden_p) / (1, hidden_p) / (hidden_p, out_p) / (1, out_p),
    with hidden_p / out_p zero-padded to multiples of 128 (lane-dense, full MXU lanes).
    Biases stay f32."""
    hidden, in_dim = w1.shape
    out_dim, hidden2 = w2.shape
    assert hidden2 == hidden, "w2 hidden dim must match w1"

    hidden_p = _round_up(hidden, _LANE)
    out_p = _round_up(out_dim, _LANE)

    w1_t = jnp.zeros((in_dim, hidden_p), compute_dtype)
    w1_t = w1_t.at[:, :hidden].set(jnp.asarray(w1, compute_dtype).T)
    b1_p = jnp.zeros((1, hidden_p), jnp.float32)
    b1_p = b1_p.at[:, :hidden].set(jnp.asarray(b1, jnp.float32)[None, :])

    w2_t = jnp.zeros((hidden_p, out_p), compute_dtype)
    w2_t = w2_t.at[:hidden, :out_dim].set(jnp.asarray(w2, compute_dtype).T)
    b2_p = jnp.zeros((1, out_p), jnp.float32)
    b2_p = b2_p.at[:, :out_dim].set(jnp.asarray(b2, jnp.float32)[None, :])

    return (w1_t, b1_p, w2_t, b2_p), out_dim


# --------------------------------------------------------------------------
# Hot path
# --------------------------------------------------------------------------
def pubg_simple_ae_apply(x, params, out_dim, *, block_b=None, block_h=None,
                         out_dtype=None, pad_output=False):
    """x (B, in_dim) -> (B, out_dim) (or (B, out_p) if pad_output=True).
    `params` from prepare_params. No per-call weight transforms, no wrapper-side
    casts or slices: the only HBM passes are the kernel's own x read / out write."""
    w1_t, b1_p, w2_t, b2_p = params
    B, in_dim = x.shape
    assert w1_t.shape[0] == in_dim, "x feature dim must match W1"
    hidden_p = w1_t.shape[1]
    out_p = w2_t.shape[1]

    out_dtype = jnp.dtype(out_dtype) if out_dtype is not None else jnp.dtype(w1_t.dtype)
    out_cols = out_p if pad_output else out_dim

    x_item = jnp.dtype(x.dtype).itemsize
    w_item = jnp.dtype(w1_t.dtype).itemsize
    o_item = out_dtype.itemsize

    # Physical (lane/sublane padded) footprints.
    in_p = _round_up(in_dim, _LANE)           # x tile minor dim pads to 128 lanes
    out_lane_p = _round_up(out_cols, _LANE)   # out tile minor dim pads to 128 lanes
    B_pad = _round_up(B, _SUBLANE)

    vmem_cap = _vmem_capacity_bytes()
    if vmem_cap >= 96 * 1024 * 1024:          # v5e / v6e: 128 MiB physical per core
        budget = int(vmem_cap * 0.7)
    else:                                      # v7x: 64 MiB physical per core -> stay tight
        budget = vmem_cap // 2
    vmem_limit = min(vmem_cap, int(vmem_cap * 0.75))

    def _weights_bytes(th, wbuf):
        return wbuf * (_round_up(in_dim, _SUBLANE) * th * w_item   # W1 chunk
                       + _SUBLANE * th * 4                          # b1 chunk (f32)
                       + th * out_p * w_item                        # W2 chunk
                       + _SUBLANE * out_p * 4)                      # b2 (f32)

    def _per_row_bytes(th, nk_):
        stream = 2 * (in_p * x_item + out_lane_p * o_item)          # double-buffered x / out
        act = th * 4                                                # f32 hidden activation
        acc = out_p * 4 if nk_ > 1 else 0                           # f32 accumulator scratch
        return stream + act + acc

    # ---- hidden-dim tiling (fallback when weights don't fit resident, e.g. v7x) ----
    if block_h is None:
        block_h = hidden_p
        if _weights_bytes(hidden_p, 1) + _SUBLANE * _per_row_bytes(hidden_p, 1) > budget:
            block_h = _LANE                   # 128 always divides hidden_p
    else:
        block_h = min(_round_up(block_h, _LANE), hidden_p)
        while hidden_p % block_h != 0:        # snap to a divisor (terminates at 128)
            block_h -= _LANE
    nk = hidden_p // block_h
    single_buffer_weights = (nk == 1)         # constant index maps -> one buffer suffices
    wbuf = 1 if single_buffer_weights else 2

    # ---- batch tile: biggest multiple of 8 that fits the VMEM budget ----
    if block_b is None:
        avail = max(budget - _weights_bytes(block_h, wbuf), _SUBLANE * _per_row_bytes(block_h, nk))
        tb = (avail // _per_row_bytes(block_h, nk)) // _SUBLANE * _SUBLANE
        tb = max(_SUBLANE, min(tb, B_pad))
        # >=2 batch steps when possible so both v7x TensorCores get work
        # (one extra grid step is ~0.35 us; harmless on single-TC chips).
        if B_pad >= 2 * _SUBLANE:
            tb = min(tb, _round_up(pl.cdiv(B_pad, 2), _SUBLANE))
        block_b = tb
    else:
        block_b = max(_SUBLANE, min(_round_up(block_b, _SUBLANE), B_pad))

    nb = pl.cdiv(B, block_b)

    flops = 2 * B * (in_dim * hidden_p + hidden_p * out_p)
    bytes_accessed = (B * in_dim * x_item
                      + w1_t.nbytes + b1_p.nbytes + w2_t.nbytes + b2_p.nbytes
                      + B * out_cols * o_item)

    def _build(single_buf):
        wkw = dict(pipeline_mode=pl.Buffered(1)) if single_buf else {}
        if nk == 1:
            grid = (nb,)
            in_specs = [
                pl.BlockSpec((block_b, in_dim), lambda i: (i, 0)),          # x: pipelined over batch
                pl.BlockSpec((in_dim, hidden_p), lambda i: (0, 0), **wkw),  # W1: resident
                pl.BlockSpec((1, hidden_p), lambda i: (0, 0), **wkw),       # b1: resident
                pl.BlockSpec((hidden_p, out_p), lambda i: (0, 0), **wkw),   # W2: resident
                pl.BlockSpec((1, out_p), lambda i: (0, 0), **wkw),          # b2: resident
            ]
            out_spec = pl.BlockSpec((block_b, out_cols), lambda i: (i, 0))
            kernel = _make_fused_kernel(out_cols)
            scratch = []
            dims = ("parallel",)
        else:
            grid = (nb, nk)                                                  # hidden chunks innermost
            in_specs = [
                pl.BlockSpec((block_b, in_dim), lambda i, k: (i, 0)),
                pl.BlockSpec((in_dim, block_h), lambda i, k: (0, k)),
                pl.BlockSpec((1, block_h), lambda i, k: (0, k)),
                pl.BlockSpec((block_h, out_p), lambda i, k: (k, 0)),
                pl.BlockSpec((1, out_p), lambda i, k: (0, 0)),
            ]
            out_spec = pl.BlockSpec((block_b, out_cols), lambda i, k: (i, 0))
            kernel = _make_hidden_tiled_kernel(out_cols)
            scratch = [pltpu.VMEM((block_b, out_p), jnp.float32)]
            dims = ("parallel", "arbitrary")
        return pl.pallas_call(
            kernel,
            out_shape=jax.ShapeDtypeStruct((B, out_cols), out_dtype),
            grid=grid,
            in_specs=in_specs,
            out_specs=out_spec,
            scratch_shapes=scratch,
            compiler_params=pltpu.CompilerParams(
                dimension_semantics=dims,
                vmem_limit_bytes=vmem_limit),
            cost_estimate=pl.CostEstimate(
                flops=flops, transcendentals=0, bytes_accessed=bytes_accessed),
        )

    args = (x, w1_t, b1_p, w2_t, b2_p)
    try:
        return _build(single_buffer_weights)(*args)
    except Exception:
        # Buffered(1) single-buffering unavailable on this jax version ->
        # fall back to the default (double-buffered) pipeline.
        return _build(False)(*args)


def pubg_simple_ae(x, w1, b1, w2, b2, *, block_b=None, block_h=None,
                   compute_dtype=jnp.float32, out_dtype=None, pad_output=False):
    """Convenience wrapper (PyTorch-layout weights). Prefer prepare_params +
    pubg_simple_ae_apply when calling repeatedly with the same weights."""
    params, out_dim = prepare_params(w1, b1, w2, b2, compute_dtype)
    return pubg_simple_ae_apply(x, params, out_dim, block_b=block_b, block_h=block_h,
                                out_dtype=out_dtype, pad_output=pad_output)


def _reference(x, w1, b1, w2, b2):
    h = jnp.maximum(x @ w1.T + b1, 0.0)
    y = jnp.maximum(h @ w2.T + b2, 0.0)
    return y


if __name__ == "__main__":
    def make_inputs(key, B, IN, HID, OUT):
        kx, k1, k2, k3, k4 = jax.random.split(key, 5)
        x = jax.random.normal(kx, (B, IN), dtype=jnp.float32)
        # PyTorch Linear layout: (out_features, in_features).
        w1 = jax.random.uniform(k1, (HID, IN), minval=-0.1, maxval=0.1, dtype=jnp.float32)
        b1 = jax.random.uniform(k2, (HID,), minval=-0.1, maxval=0.1, dtype=jnp.float32)
        w2 = jax.random.uniform(k3, (OUT, HID), minval=-0.1, maxval=0.1, dtype=jnp.float32)
        b2 = jax.random.uniform(k4, (OUT,), minval=-0.1, maxval=0.1, dtype=jnp.float32)
        return x, w1, b1, w2, b2

    B, IN_DIM, HIDDEN, OUT_DIM = 64, 16, 32, 16
    x, w1, b1, w2, b2 = make_inputs(jax.random.PRNGKey(0), B, IN_DIM, HIDDEN, OUT_DIM)
    ref = _reference(x, w1, b1, w2, b2)

    # 1) f32 path, auto-selected batch tile (>=2 parallel grid steps).
    params_f32, out_dim = prepare_params(w1, b1, w2, b2, jnp.float32)
    out = jax.block_until_ready(pubg_simple_ae_apply(x, params_f32, out_dim))
    assert out.shape == (B, OUT_DIM)
    assert jnp.allclose(out, ref, atol=1e-5, rtol=1e-5), "f32 Pallas output mismatch"

    # 2) f32 path, explicit small batch tile -> 4-step pipelined grid, resident weights.
    out_tiled = jax.block_until_ready(
        pubg_simple_ae_apply(x, params_f32, out_dim, block_b=16))
    assert jnp.allclose(out_tiled, ref, atol=1e-5, rtol=1e-5), "tiled Pallas output mismatch"

    # 3) Ragged batch (B=50, not a multiple of 8 or block_b) -> masked edge blocks.
    x_r = x[:50]
    out_r = jax.block_until_ready(
        pubg_simple_ae_apply(x_r, params_f32, out_dim, block_b=16))
    assert out_r.shape == (50, OUT_DIM)
    assert jnp.allclose(out_r, ref[:50], atol=1e-5, rtol=1e-5), "ragged-B Pallas output mismatch"

    # 4) bf16 weights + bf16 output (x cast in-kernel, f32 MXU accumulation, f32 epilogue).
    params_bf16, _ = prepare_params(w1, b1, w2, b2, jnp.bfloat16)
    out_bf16 = jax.block_until_ready(pubg_simple_ae_apply(x, params_bf16, out_dim))
    assert out_bf16.dtype == jnp.bfloat16
    assert jnp.allclose(out_bf16.astype(jnp.float32), ref, atol=2e-2, rtol=2e-2), \
        "bf16 Pallas output mismatch"

    # 5) Hidden-dim tiled fallback path (hidden=200 -> hidden_p=256, block_h=128 -> 2 K-steps).
    x2, w1b, b1b, w2b, b2b = make_inputs(jax.random.PRNGKey(1), 48, IN_DIM, 200, OUT_DIM)
    ref2 = _reference(x2, w1b, b1b, w2b, b2b)
    params2, out_dim2 = prepare_params(w1b, b1b, w2b, b2b, jnp.float32)
    out2 = jax.block_until_ready(
        pubg_simple_ae_apply(x2, params2, out_dim2, block_b=16, block_h=128))
    assert jnp.allclose(out2, ref2, atol=1e-5, rtol=1e-5), "hidden-tiled Pallas output mismatch"

    # 6) Padded, lane-dense output path for downstream consumers (no wrapper slice).
    out_pad = jax.block_until_ready(
        pubg_simple_ae_apply(x, params_f32, out_dim, pad_output=True))
    assert out_pad.shape == (B, 128)
    assert jnp.allclose(out_pad[:, :OUT_DIM], ref, atol=1e-5, rtol=1e-5), \
        "padded-output Pallas mismatch"

    print("KERNEL_OK")
</pallas_src>

<mosaic_0001>
module attributes {stable_mosaic.version = 11 : i64} {
  func.func @kernel(%arg0: i32, %arg1: memref<32x16xf32, #tpu.memory_space<vmem>>, %arg2: memref<16x128xf32, #tpu.memory_space<vmem>>, %arg3: memref<1x128xf32, #tpu.memory_space<vmem>>, %arg4: memref<128x128xf32, #tpu.memory_space<vmem>>, %arg5: memref<1x128xf32, #tpu.memory_space<vmem>>, %arg6: memref<32x16xf32, #tpu.memory_space<vmem>>) attributes {dimension_semantics = [#tpu.dimension_semantics<parallel>], iteration_bounds = array<i64: 2>, scalar_prefetch = 0 : i64, scratch_operands = 0 : i64, tpu.core_type = #tpu.core_type<tc>, window_params = [{transform_indices = @transform_0, window_bounds = array<i64: 32, 16>}, {pipeline_mode = #tpu.pipeline_mode<synchronous>, transform_indices = @transform_1, window_bounds = array<i64: 16, 128>}, {pipeline_mode = #tpu.pipeline_mode<synchronous>, transform_indices = @transform_2, window_bounds = array<i64: 1, 128>}, {pipeline_mode = #tpu.pipeline_mode<synchronous>, transform_indices = @transform_3, window_bounds = array<i64: 128, 128>}, {pipeline_mode = #tpu.pipeline_mode<synchronous>, transform_indices = @transform_4, window_bounds = array<i64: 1, 128>}, {transform_indices = @transform_5, window_bounds = array<i64: 32, 16>}]} {
    %c0 = arith.constant 0 : index
    %c0_0 = arith.constant 0 : index
    %0 = vector.load %arg1[%c0, %c0_0] : memref<32x16xf32, #tpu.memory_space<vmem>>, vector<32x16xf32>
    %c0_1 = arith.constant 0 : index
    %c0_2 = arith.constant 0 : index
    %1 = vector.load %arg2[%c0_1, %c0_2] : memref<16x128xf32, #tpu.memory_space<vmem>>, vector<16x128xf32>
    %cst = arith.constant dense<0.000000e+00> : vector<32x128xf32>
    %2 = tpu.matmul %0, %1, %cst {dimension_numbers = #tpu.dot_dimension_numbers<[1], [0], [0], [1], [0, 0, 1, 1], [], []>} : vector<32x16xf32>, vector<16x128xf32>, vector<32x128xf32> -> vector<32x128xf32>
    %c0_3 = arith.constant 0 : index
    %c0_4 = arith.constant 0 : index
    %3 = vector.load %arg3[%c0_3, %c0_4] : memref<1x128xf32, #tpu.memory_space<vmem>>, vector<1x128xf32>
    %4 = vector.broadcast %3 : vector<1x128xf32> to vector<32x128xf32>
    %5 = arith.addf %2, %4 : vector<32x128xf32>
    %cst_5 = arith.constant 0.000000e+00 : f32
    %6 = vector.broadcast %cst_5 : f32 to vector<32x128xf32>
    %7 = arith.maximumf %5, %6 : vector<32x128xf32>
    %c0_6 = arith.constant 0 : index
    %c0_7 = arith.constant 0 : index
    %8 = vector.load %arg4[%c0_6, %c0_7] : memref<128x128xf32, #tpu.memory_space<vmem>>, vector<128x128xf32>
    %cst_8 = arith.constant dense<0.000000e+00> : vector<32x128xf32>
    %9 = tpu.matmul %7, %8, %cst_8 {dimension_numbers = #tpu.dot_dimension_numbers<[1], [0], [0], [1], [0, 0, 1, 1], [], []>} : vector<32x128xf32>, vector<128x128xf32>, vector<32x128xf32> -> vector<32x128xf32>
    %c0_9 = arith.constant 0 : index
    %c0_10 = arith.constant 0 : index
    %10 = vector.load %arg5[%c0_9, %c0_10] : memref<1x128xf32, #tpu.memory_space<vmem>>, vector<1x128xf32>
    %11 = vector.broadcast %10 : vector<1x128xf32> to vector<32x128xf32>
    %12 = arith.addf %9, %11 : vector<32x128xf32>
    %cst_11 = arith.constant 0.000000e+00 : f32
    %13 = vector.broadcast %cst_11 : f32 to vector<32x128xf32>
    %14 = arith.maximumf %12, %13 : vector<32x128xf32>
    %15 = vector.extract_strided_slice %14 {offsets = [0, 0], sizes = [32, 16], strides = [1, 1]} : vector<32x128xf32> to vector<32x16xf32>
    %c0_12 = arith.constant 0 : index
    %c0_13 = arith.constant 0 : index
    %16 = vector.load %arg6[%c0_12, %c0_13] : memref<32x16xf32, #tpu.memory_space<vmem>>, vector<32x16xf32>
    tpu.vector_store %arg6[%c0_12, %c0_13], %15 {strides = array<i32>} : memref<32x16xf32, #tpu.memory_space<vmem>>, vector<32x16xf32>,
    return
  }
  func.func @transform_0(%arg0: i32) -> (i32, i32) {
    %c0_i32 = arith.constant 0 : i32
    %c0_i32_0 = arith.constant 0 : i32
    return %arg0, %c0_i32 : i32, i32
  }
  func.func @transform_1(%arg0: i32) -> (i32, i32) {
    %c0_i32 = arith.constant 0 : i32
    %c0_i32_0 = arith.constant 0 : i32
    %c0_i32_1 = arith.constant 0 : i32
    return %c0_i32, %c0_i32_0 : i32, i32
  }
  func.func @transform_2(%arg0: i32) -> (i32, i32) {
    %c0_i32 = arith.constant 0 : i32
    %c0_i32_0 = arith.constant 0 : i32
    %c0_i32_1 = arith.constant 0 : i32
    return %c0_i32, %c0_i32_0 : i32, i32
  }
  func.func @transform_3(%arg0: i32) -> (i32, i32) {
    %c0_i32 = arith.constant 0 : i32
    %c0_i32_0 = arith.constant 0 : i32
    %c0_i32_1 = arith.constant 0 : i32
    return %c0_i32, %c0_i32_0 : i32, i32
  }
  func.func @transform_4(%arg0: i32) -> (i32, i32) {
    %c0_i32 = arith.constant 0 : i32
    %c0_i32_0 = arith.constant 0 : i32
    %c0_i32_1 = arith.constant 0 : i32
    return %c0_i32, %c0_i32_0 : i32, i32
  }
  func.func @transform_5(%arg0: i32) -> (i32, i32) {
    %c0_i32 = arith.constant 0 : i32
    %c0_i32_0 = arith.constant 0 : i32
    return %arg0, %c0_i32 : i32, i32
  }
}

module attributes {stable_mosaic.version = 11 : i64} {
  func.func @kernel(%arg0: i32, %arg1: memref<32x16xf32, #tpu.memory_space<vmem>>, %arg2: memref<16x128xf32, #tpu.memory_space<vmem>>, %arg3: memref<1x128xf32, #tpu.memory_space<vmem>>, %arg4: memref<128x128xf32, #tpu.memory_space<vmem>>, %arg5: memref<1x128xf32, #tpu.memory_space<vmem>>, %arg6: memref<32x16xf32, #tpu.memory_space<vmem>>) attributes {dimension_semantics = [#tpu.dimension_semantics<parallel>], iteration_bounds = array<i64: 2>, scalar_prefetch = 0 : i64, scratch_operands = 0 : i64, tpu.core_type = #tpu.core_type<tc>, window_params = [{transform_indices = @transform_0, window_bounds = array<i64: 32, 16>}, {pipeline_mode = #tpu.pipeline_mode<synchronous>, transform_indices = @transform_1, window_bounds = array<i64: 16, 128>}, {pipeline_mode = #tpu.pipeline_mode<synchronous>, transform_indices = @transform_2, window_bounds = array<i64: 1, 128>}, {pipeline_mode = #tpu.pipeline_mode<synchronous>, transform_indices = @transform_3, window_bounds = array<i64: 128, 128>}, {pipeline_mode = #tpu.pipeline_mode<synchronous>, transform_indices = @transform_4, window_bounds = array<i64: 1, 128>}, {transform_indices = @transform_5, window_bounds = array<i64: 32, 16>}]} {
    %c0 = arith.constant 0 : index
    %c0_0 = arith.constant 0 : index
    %0 = vector.load %arg1[%c0, %c0_0] : memref<32x16xf32, #tpu.memory_space<vmem>>, vector<32x16xf32>
    %c0_1 = arith.constant 0 : index
    %c0_2 = arith.constant 0 : index
    %1 = vector.load %arg2[%c0_1, %c0_2] : memref<16x128xf32, #tpu.memory_space<vmem>>, vector<16x128xf32>
    %cst = arith.constant dense<0.000000e+00> : vector<32x128xf32>
    %2 = tpu.matmul %0, %1, %cst {dimension_numbers = #tpu.dot_dimension_numbers<[1], [0], [0], [1], [0, 0, 1, 1], [], []>} : vector<32x16xf32>, vector<16x128xf32>, vector<32x128xf32> -> vector<32x128xf32>
    %c0_3 = arith.constant 0 : index
    %c0_4 = arith.constant 0 : index
    %3 = vector.load %arg3[%c0_3, %c0_4] : memref<1x128xf32, #tpu.memory_space<vmem>>, vector<1x128xf32>
    %4 = vector.broadcast %3 : vector<1x128xf32> to vector<32x128xf32>
    %5 = arith.addf %2, %4 : vector<32x128xf32>
    %cst_5 = arith.constant 0.000000e+00 : f32
    %6 = vector.broadcast %cst_5 : f32 to vector<32x128xf32>
    %7 = arith.maximumf %5, %6 : vector<32x128xf32>
    %c0_6 = arith.constant 0 : index
    %c0_7 = arith.constant 0 : index
    %8 = vector.load %arg4[%c0_6, %c0_7] : memref<128x128xf32, #tpu.memory_space<vmem>>, vector<128x128xf32>
    %cst_8 = arith.constant dense<0.000000e+00> : vector<32x128xf32>
    %9 = tpu.matmul %7, %8, %cst_8 {dimension_numbers = #tpu.dot_dimension_numbers<[1], [0], [0], [1], [0, 0, 1, 1], [], []>} : vector<32x128xf32>, vector<128x128xf32>, vector<32x128xf32> -> vector<32x128xf32>
    %c0_9 = arith.constant 0 : index
    %c0_10 = arith.constant 0 : index
    %10 = vector.load %arg5[%c0_9, %c0_10] : memref<1x128xf32, #tpu.memory_space<vmem>>, vector<1x128xf32>
    %11 = vector.broadcast %10 : vector<1x128xf32> to vector<32x128xf32>
    %12 = arith.addf %9, %11 : vector<32x128xf32>
    %cst_11 = arith.constant 0.000000e+00 : f32
    %13 = vector.broadcast %cst_11 : f32 to vector<32x128xf32>
    %14 = arith.maximumf %12, %13 : vector<32x128xf32>
    %15 = vector.extract_strided_slice %14 {offsets = [0, 0], sizes = [32, 16], strides = [1, 1]} : vector<32x128xf32> to vector<32x16xf32>
    %c0_12 = arith.constant 0 : index
    %c0_13 = arith.constant 0 : index
    %16 = vector.load %arg6[%c0_12, %c0_13] : memref<32x16xf32, #tpu.memory_space<vmem>>, vector<32x16xf32>
    tpu.vector_store %arg6[%c0_12, %c0_13], %15 {strides = array<i32>} : memref<32x16xf32, #tpu.memory_space<vmem>>, vector<32x16xf32>,
    return
  }
  func.func @transform_0(%arg0: i32) -> (i32, i32) {
    %c0_i32 = arith.constant 0 : i32
    %c0_i32_0 = arith.constant 0 : i32
    return %arg0, %c0_i32 : i32, i32
  }
  func.func @transform_1(%arg0: i32) -> (i32, i32) {
    %c0_i32 = arith.constant 0 : i32
    %c0_i32_0 = arith.constant 0 : i32
    %c0_i32_1 = arith.constant 0 : i32
    return %c0_i32, %c0_i32_0 : i32, i32
  }
  func.func @transform_2(%arg0: i32) -> (i32, i32) {
    %c0_i32 = arith.constant 0 : i32
    %c0_i32_0 = arith.constant 0 : i32
    %c0_i32_1 = arith.constant 0 : i32
    return %c0_i32, %c0_i32_0 : i32, i32
  }
  func.func @transform_3(%arg0: i32) -> (i32, i32) {
    %c0_i32 = arith.constant 0 : i32
    %c0_i32_0 = arith.constant 0 : i32
    %c0_i32_1 = arith.constant 0 : i32
    return %c0_i32, %c0_i32_0 : i32, i32
  }
  func.func @transform_4(%arg0: i32) -> (i32, i32) {
    %c0_i32 = arith.constant 0 : i32
    %c0_i32_0 = arith.constant 0 : i32
    %c0_i32_1 = arith.constant 0 : i32
    return %c0_i32, %c0_i32_0 : i32, i32
  }
  func.func @transform_5(%arg0: i32) -> (i32, i32) {
    %c0_i32 = arith.constant 0 : i32
    %c0_i32_0 = arith.constant 0 : i32
    return %arg0, %c0_i32 : i32, i32
  }
}

</mosaic_0001>

<bundles_post_ra>
// kernel: tpu_custom_call.1
= control target key start
LH: loop header
LB: loop body
LE: loop exit
PB: predicated region body
PF: predicated region fallthrough
CT: control target
= control target key end

     0   :  { %10 = vsyncpa [#allocation3], 0  ;;  %s765_s18 = smov 0   ;;  %s851_s0 = inlined_call_operand.vmem [shape: f32[64,16], index: 0, kind: input, shape index: {}]   ;;  %s852_s1 = inlined_call_operand.vmem [shape: f32[16,128], index: 1, kind: input, shape index: {}]   ;;  %s853_s2 = inlined_call_operand.vmem [shape: f32[1,128], index: 2, kind: input, shape index: {}]   ;;  %s854_s3 = inlined_call_operand.hbm [shape: f32[128,128], index: 3, kind: input, shape index: {}]   ;;  %s855_s4 = inlined_call_operand.vmem [shape: f32[1,128], index: 4, kind: input, shape index: {}]   ;;  %s856_s5 = inlined_call_operand.vmem [shape: f32[64,16], index: 5, kind: output, shape index: {}]  }
   0x1 LB: > { %s542_s19 = sadd.s32 4294967295, %s730_s18   ;;  %p544_p0 = scmp.ge.s32.totalorder %s730_s18, 1  ;;  %s730_s18 = sphi %s765_s18, %s16_s18  }
   0x2   : > { %p157_p1 = scmp.lt.s32.totalorder %s730_s18, 3  ;;  %s732_s20 = smov [#allocation2]  }
   0x3   : > { %s175_s21 = sshll.u32 %s732_s20, 4  ;;  %p779_p3 = scmp.eq.s32.totalorder %s542_s19, 0  ;;  %s176_s21 = int_to_ptr.vmem [resolvable:$true] %s175_s21 }
   0x4   : > { %p773_p2 = pnand %p544_p0, %p157_p1  ;;  %s692_s27 = scalar_lea.hbm %s854_s3, 2048 }
   0x5   : > { %s861_s23 = scalar_select %p779_p3, 1, 0 }
   0x6   : > { %s860_s22 = scalar_select %p773_p2, 1, 0 }
   0x7   : > { %p675_p4 = pneg %p773_p2  ;;  %p693_p6 = scmp.ne.s32.totalorder %s854_s3, %s692_s27 }
   0x8   : > { %p699_p10 = scmp.lt.u32.totalorder %s692_s27, %s854_s3 }
   0x9   : > { %p787_p5 = pnand %p779_p3, %p675_p4 }
   0xb   : > { %p694_p7 = pneg %p787_p5 }
   0xd   : > { %p695_p8 = pnand %p694_p7, %p693_p6 }
   0xf   : > { %p696_p9 = pneg %p695_p8 }
  0x11   : > { %p701_p11 = pnand %p699_p10, %p696_p9 }
  0x13   : > { %704 = shalt.err (!%p701_p11)
}
  0x14   : > { %s705_s7 = scalar_lea.vmem %s176_s21, 2048  ;;  %p713_p1 = scmp.lt.s32.totalorder %s176_s21, %s176_s21 }
  0x15   : > { %p706_p12 = scmp.ne.s32.totalorder %s176_s21, %s705_s7  ;;  %p714_p4 = scmp.lt.s32.totalorder %s705_s7, %s705_s7 }
  0x17   : > { %p708_p13 = pnand %p706_p12, %p694_p7  ;;  %p715_p3 = por %p714_p4, %p713_p1 }
  0x19   : > { %p709_p0 = pneg %p708_p13 }
  0x1b   : > { %p716_p2 = pnand %p715_p3, %p709_p0 }
  0x1d   : > { %719 = shalt.err (!%p716_p2)
}
  0x1e   : > { %s733_s8 = smov 128   ;;  %s734_s9 = smov 8  }
  0x1f   : > { %678 = dma.hbm_to_vmem [thread:$0]  (!%p787_p5), %s854_s3, 2048, %s176_s21, [#allocation3], %s733_s8, %s733_s8, %s734_s9  }
  0x20   : > { %p863_p6 = scmp.ne.s32.totalorder %s860_s22, 0 }
  0x21   : > { %p864_p8 = scmp.ne.s32.totalorder (!%p863_p6), %s861_s23, 0 }
  0x22   : > { %203 = sbr.rel (%p863_p6) target bundleno = 490 (0x1ea), region = 40 }
  0x29   : > { %725 = dma.done.wait (%p864_p8), [#allocation3], 2048  }
  0x2a   : > { %727 = vsyncadd (%p864_p8), [#allocation3], 4294965248  ;;  %s549_s12 = sshll.u32 %s542_s19, 2  ;;  %vm256_vm0 = vcmask 130048   ;;  %v247_v0 = vld [vmem:[%s852_s1] sm:$0xff]  ;;  %v248_v1 = vld [vmem:[%s852_s1 + $0x8] sm:$0xff] }
  0x2b   : > { %p232_p2 = scmp.lt.s32.totalorder %s549_s12, 7  ;;  %v635_v3 = vpack.c.bf16 %v248_v1, %v247_v0  ;;  %v358_v4 = vld [vmem:[#allocation2] sm:$0xff]  ;;  %v359_v5 = vld [vmem:[#allocation2 + $0x8] sm:$0xff]  ;;  %v360_v6 = vld [vmem:[#allocation2 + $0x10] sm:$0xff] }
  0x2c   : > { %v639_v7 = vpack.c.bf16 %v359_v5, %v358_v4  ;;  %v361_v8 = vld [vmem:[#allocation2 + $0x18] sm:$0xff]  ;;  %v362_v11 = vld [vmem:[#allocation2 + $0x20] sm:$0xff]  ;;  %v363_v12 = vld [vmem:[#allocation2 + $0x28] sm:$0xff] }
  0x2d   : > { %s866_s12 = smov (!%p232_p2, %s549_s12), 7  ;;  %636 = vmatprep.subr.bf16.mxu0 %v635_v3  ;;  %v643_v10 = vpack.c.bf16 %v361_v8, %v360_v6  ;;  %v647_v14 = vpack.c.bf16 %v363_v12, %v362_v11  ;;  %v364_v16 = vld [vmem:[#allocation2 + $0x30] sm:$0xff]  ;;  %v365_v17 = vld [vmem:[#allocation2 + $0x38] sm:$0xff]  ;;  %v366_v19 = vld [vmem:[#allocation2 + $0x40] sm:$0xff] }
  0x2e   : > { %s550_s13 = sshll.u32 %s866_s12, 3  ;;  %638 = vmatpush3.bf16.msra.mxu0 %v635_v3  ;;  %640 = vmatprep.subr.bf16.mxu1 %v639_v7  ;;  %v651_v18 = vpack.c.bf16 %v365_v17, %v364_v16  ;;  %v367_v20 = vld [vmem:[#allocation2 + $0x48] sm:$0xff]  ;;  %v368_v22 = vld [vmem:[#allocation2 + $0x50] sm:$0xff]  ;;  %v369_v23 = vld [vmem:[#allocation2 + $0x58] sm:$0xff] }
  0x2f   : > { %s235_s16 = scalar_lea.vmem %s851_s0, %s550_s13  ;;  %642 = vmatpush3.bf16.msra.mxu1 %v639_v7  ;;  %v655_v21 = vpack.c.bf16 %v367_v20, %v366_v19  ;;  %v659_v24 = vpack.c.bf16 %v369_v23, %v368_v22  ;;  %v370_v25 = vld [vmem:[#allocation2 + $0x60] sm:$0xff]  ;;  %v371_v26 = vld [vmem:[#allocation2 + $0x68] sm:$0xff]  ;;  %v372_v28 = vld [vmem:[#allocation2 + $0x70] sm:$0xff]  ;;  %s241_s28 = scalar_lea.vmem %s856_s5, %s550_s13 }
  0x30   : > { %v243_v2 = vld [vmem:[%s235_s16] sm:$0xff]  ;;  %v244_v9 = vld [vmem:[%s235_s16 + $0x8] sm:$0xff]  ;;  %v245_v13 = vld [vmem:[%s235_s16 + $0x10] sm:$0xff]  ;;  %644 = vmatprep.subr.bf16.mxu1 %v643_v10  ;;  %v663_v27 = vpack.c.bf16 %v371_v26, %v370_v25 }
  0x31   : > { %591 = vmatprep.mubr.msk.f32.mxu0 %vm256_vm0, %v243_v2  ;;  %v246_v15 = vld [vmem:[%s235_s16 + $0x18] sm:$0xff]  ;;  %v553_v31 = vld [vmem:[%s853_s2] ss:$0 sm:$0xff] }
  0x32   : > { %592 = vmatmul.mubr.msk.f32.vlgmr.msra.gmra.mrb[0].mxu0 %vm256_vm0, %v244_v9  ;;  %v373_v29 = vld [vmem:[#allocation2 + $0x78] sm:$0xff]  ;;  %v558_v44 = vld [vmem:[%s855_s4] ss:$0 sm:$0xff] }
  0x33   : > { %594 = vmatprep.mubr.msk.f32.mxu0 %vm256_vm0, %v245_v13  ;;  %646 = vmatpush3.bf16.msra.mxu1 %v643_v10  ;;  %v667_v30 = vpack.c.bf16 %v373_v29, %v372_v28 }
  0x34   : > { %648 = vmatprep.subr.bf16.mxu1 %v647_v14 }
  0x36   : > { %595 = vmatmul.mubr.msk.f32.gmra.mrb[2].mxu0 %vm256_vm0, %v246_v15 }
  0x37   : > { %650 = vmatpush3.bf16.msra.mxu1 %v647_v14 }
  0x38   : > { %652 = vmatprep.subr.bf16.mxu1 %v651_v18 }
  0x3b   : > { %654 = vmatpush3.bf16.msra.mxu1 %v651_v18 }
  0x3c   : > { %656 = vmatprep.subr.bf16.mxu1 %v655_v21 }
  0x3f   : > { %658 = vmatpush3.bf16.msra.mxu1 %v655_v21 }
  0x40   : > { %660 = vmatprep.subr.bf16.mxu1 %v659_v24 }
  0x43   : > { %662 = vmatpush3.bf16.msra.mxu1 %v659_v24 }
  0x44   : > { %664 = vmatprep.subr.bf16.mxu1 %v663_v27 }
  0x47   : > { %666 = vmatpush3.bf16.msra.mxu1 %v663_v27 }
  0x48   : > { %668 = vmatprep.subr.bf16.mxu1 %v667_v30 }
  0x4b   : > { %670 = vmatpush3.bf16.msra.mxu1 %v667_v30 }
 0x105   : > { %v593_v32 = vpop.f32.mrb[0].mxu0 }
 0x106   : > { %v341_v33 = vadd.f32 %v593_v32, %v553_v31  ;;  %v335_v34 = vpop.f32.mrb[1].mxu0 }
 0x107   : > { %v336_v35 = vadd.f32 %v553_v31, %v335_v34 }
 0x108   : > { %v355_v38 = vmax.f32 %v341_v33, 0.0 }
 0x109   : > { %v596_v36 = vpop.f32.mrb[2].mxu0  ;;  %v354_v37 = vmax.f32 %v336_v35, 0.0 }
 0x10a   : > { %v351_v39 = vadd.f32 %v596_v36, %v553_v31  ;;  %v345_v40 = vpop.f32.mrb[3].mxu0 }
 0x10b   : > { %v346_v41 = vadd.f32 %v553_v31, %v345_v40  ;;  %629 = vmatprep.mubr.f32.mxu1 %v354_v37 }
 0x10c   : > { %630 = vmatmul.mubr.f32.vlgmr.msra.gmra.mrb[0].mxu1 %v355_v38  ;;  %v357_v43 = vmax.f32 %v351_v39, 0.0 }
 0x10d   : > { %v356_v42 = vmax.f32 %v346_v41, 0.0 }
 0x10f   : > { %632 = vmatprep.mubr.f32.mxu1 %v356_v42 }
 0x110   : > { %633 = vmatmul.mubr.f32.gmra.mrb[2].mxu1 %v357_v43 }
 0x1df   : > { %v631_v45 = vpop.f32.mrb[0].mxu1 }
 0x1e0   : > { %v453_v46 = vadd.f32 %v631_v45, %v558_v44  ;;  %v447_v47 = vpop.f32.mrb[1].mxu1 }
 0x1e1   : > { %v448_v48 = vadd.f32 %v558_v44, %v447_v47 }
 0x1e2   : > { %v467_v51 = vmax.f32 %v453_v46, 0.0 }
 0x1e3   : > { %v466_v49 = vmax.f32 %v448_v48, 0.0  ;;  %v634_v50 = vpop.f32.mrb[2].mxu1 }
 0x1e4   : > { %v463_v52 = vadd.f32 %v634_v50, %v558_v44  ;;  %v457_v53 = vpop.f32.mrb[3].mxu1  ;;  %471 = vst.msk [vmem:[%s241_s28 + $0x8] sm:$0xff] %vm256_vm0, %v467_v51 }
 0x1e5   : > { %470 = vst.msk [vmem:[%s241_s28] sm:$0xff] %vm256_vm0, %v466_v49  ;;  %v458_v54 = vadd.f32 %v558_v44, %v457_v53 }
 0x1e6   : > { %v469_v56 = vmax.f32 %v463_v52, 0.0 }
 0x1e7   : > { %v468_v55 = vmax.f32 %v458_v54, 0.0 }
 0x1e8   : > { %473 = vst.msk [vmem:[%s241_s28 + $0x18] sm:$0xff] %vm256_vm0, %v469_v56 }
 0x1e9   : > { %472 = vst.msk [vmem:[%s241_s28 + $0x10] sm:$0xff] %vm256_vm0, %v468_v55 }
 0x1ea PF: > { %s16_s18 = sadd.s32 1, %s730_s18  }
 0x1eb   : > { %p13_p3 = scmp.ge.s32.totalorder %s16_s18, 4  }
 0x1ed   :  { %15 = sbr.rel (!%p13_p3) target bundleno = 1 (0x1), region = 75 }
 0x1f4   :  { %496 = vsyncpa [#allocation3], 1 }
 0x1f5   :  { %498 = vsyncpa [#allocation3 + $0x1], 1 }

// kernel: tpu_custom_call.1
= control target key start
LH: loop header
LB: loop body
LE: loop exit
PB: predicated region body
PF: predicated region fallthrough
CT: control target
= control target key end

     0   :  { %10 = vsyncpa [#allocation3], 0  ;;  %s765_s18 = smov 0   ;;  %s851_s0 = inlined_call_operand.vmem [shape: f32[64,16], index: 0, kind: input, shape index: {}]   ;;  %s852_s1 = inlined_call_operand.vmem [shape: f32[16,128], index: 1, kind: input, shape index: {}]   ;;  %s853_s2 = inlined_call_operand.vmem [shape: f32[1,128], index: 2, kind: input, shape index: {}]   ;;  %s854_s3 = inlined_call_operand.hbm [shape: f32[128,128], index: 3, kind: input, shape index: {}]   ;;  %s855_s4 = inlined_call_operand.vmem [shape: f32[1,128], index: 4, kind: input, shape index: {}]   ;;  %s856_s5 = inlined_call_operand.vmem [shape: f32[64,16], index: 5, kind: output, shape index: {}]  }
   0x1 LB: > { %s542_s19 = sadd.s32 4294967295, %s730_s18   ;;  %p544_p0 = scmp.ge.s32.totalorder %s730_s18, 1  ;;  %s730_s18 = sphi %s765_s18, %s16_s18  }
   0x2   : > { %p157_p1 = scmp.lt.s32.totalorder %s730_s18, 3  ;;  %s732_s20 = smov [#allocation2]  }
   0x3   : > { %s175_s21 = sshll.u32 %s732_s20, 4  ;;  %p779_p3 = scmp.eq.s32.totalorder %s542_s19, 0  ;;  %s176_s21 = int_to_ptr.vmem [resolvable:$true] %s175_s21 }
   0x4   : > { %p773_p2 = pnand %p544_p0, %p157_p1  ;;  %s692_s27 = scalar_lea.hbm %s854_s3, 2048 }
   0x5   : > { %s861_s23 = scalar_select %p779_p3, 1, 0 }
   0x6   : > { %s860_s22 = scalar_select %p773_p2, 1, 0 }
   0x7   : > { %p675_p4 = pneg %p773_p2  ;;  %p693_p6 = scmp.ne.s32.totalorder %s854_s3, %s692_s27 }
   0x8   : > { %p699_p10 = scmp.lt.u32.totalorder %s692_s27, %s854_s3 }
   0x9   : > { %p787_p5 = pnand %p779_p3, %p675_p4 }
   0xb   : > { %p694_p7 = pneg %p787_p5 }
   0xd   : > { %p695_p8 = pnand %p694_p7, %p693_p6 }
   0xf   : > { %p696_p9 = pneg %p695_p8 }
  0x11   : > { %p701_p11 = pnand %p699_p10, %p696_p9 }
  0x13   : > { %704 = shalt.err (!%p701_p11)
}
  0x14   : > { %s705_s7 = scalar_lea.vmem %s176_s21, 2048  ;;  %p713_p1 = scmp.lt.s32.totalorder %s176_s21, %s176_s21 }
  0x15   : > { %p706_p12 = scmp.ne.s32.totalorder %s176_s21, %s705_s7  ;;  %p714_p4 = scmp.lt.s32.totalorder %s705_s7, %s705_s7 }
  0x17   : > { %p708_p13 = pnand %p706_p12, %p694_p7  ;;  %p715_p3 = por %p714_p4, %p713_p1 }
  0x19   : > { %p709_p0 = pneg %p708_p13 }
  0x1b   : > { %p716_p2 = pnand %p715_p3, %p709_p0 }
  0x1d   : > { %719 = shalt.err (!%p716_p2)
}
  0x1e   : > { %s733_s8 = smov 128   ;;  %s734_s9 = smov 8  }
  0x1f   : > { %678 = dma.hbm_to_vmem [thread:$0]  (!%p787_p5), %s854_s3, 2048, %s176_s21, [#allocation3], %s733_s8, %s733_s8, %s734_s9  }
  0x20   : > { %p863_p6 = scmp.ne.s32.totalorder %s860_s22, 0 }
  0x21   : > { %p864_p8 = scmp.ne.s32.totalorder (!%p863_p6), %s861_s23, 0 }
  0x22   : > { %203 = sbr.rel (%p863_p6) target bundleno = 490 (0x1ea), region = 40 }
  0x29   : > { %725 = dma.done.wait (%p864_p8), [#allocation3], 2048  }
  0x2a   : > { %727 = vsyncadd (%p864_p8), [#allocation3], 4294965248  ;;  %s549_s12 = sshll.u32 %s542_s19, 2  ;;  %vm256_vm0 = vcmask 130048   ;;  %v247_v0 = vld [vmem:[%s852_s1] sm:$0xff]  ;;  %v248_v1 = vld [vmem:[%s852_s1 + $0x8] sm:$0xff] }
  0x2b   : > { %p232_p2 = scmp.lt.s32.totalorder %s549_s12, 7  ;;  %v635_v3 = vpack.c.bf16 %v248_v1, %v247_v0  ;;  %v358_v4 = vld [vmem:[#allocation2] sm:$0xff]  ;;  %v359_v5 = vld [vmem:[#allocation2 + $0x8] sm:$0xff]  ;;  %v360_v6 = vld [vmem:[#allocation2 + $0x10] sm:$0xff] }
  0x2c   : > { %v639_v7 = vpack.c.bf16 %v359_v5, %v358_v4  ;;  %v361_v8 = vld [vmem:[#allocation2 + $0x18] sm:$0xff]  ;;  %v362_v11 = vld [vmem:[#allocation2 + $0x20] sm:$0xff]  ;;  %v363_v12 = vld [vmem:[#allocation2 + $0x28] sm:$0xff] }
  0x2d   : > { %s866_s12 = smov (!%p232_p2, %s549_s12), 7  ;;  %636 = vmatprep.subr.bf16.mxu0 %v635_v3  ;;  %v643_v10 = vpack.c.bf16 %v361_v8, %v360_v6  ;;  %v647_v14 = vpack.c.bf16 %v363_v12, %v362_v11  ;;  %v364_v16 = vld [vmem:[#allocation2 + $0x30] sm:$0xff]  ;;  %v365_v17 = vld [vmem:[#allocation2 + $0x38] sm:$0xff]  ;;  %v366_v19 = vld [vmem:[#allocation2 + $0x40] sm:$0xff] }
  0x2e   : > { %s550_s13 = sshll.u32 %s866_s12, 3  ;;  %638 = vmatpush3.bf16.msra.mxu0 %v635_v3  ;;  %640 = vmatprep.subr.bf16.mxu1 %v639_v7  ;;  %v651_v18 = vpack.c.bf16 %v365_v17, %v364_v16  ;;  %v367_v20 = vld [vmem:[#allocation2 + $0x48] sm:$0xff]  ;;  %v368_v22 = vld [vmem:[#allocation2 + $0x50] sm:$0xff]  ;;  %v369_v23 = vld [vmem:[#allocation2 + $0x58] sm:$0xff] }
  0x2f   : > { %s235_s16 = scalar_lea.vmem %s851_s0, %s550_s13  ;;  %642 = vmatpush3.bf16.msra.mxu1 %v639_v7  ;;  %v655_v21 = vpack.c.bf16 %v367_v20, %v366_v19  ;;  %v659_v24 = vpack.c.bf16 %v369_v23, %v368_v22  ;;  %v370_v25 = vld [vmem:[#allocation2 + $0x60] sm:$0xff]  ;;  %v371_v26 = vld [vmem:[#allocation2 + $0x68] sm:$0xff]  ;;  %v372_v28 = vld [vmem:[#allocation2 + $0x70] sm:$0xff]  ;;  %s241_s28 = scalar_lea.vmem %s856_s5, %s550_s13 }
  0x30   : > { %v243_v2 = vld [vmem:[%s235_s16] sm:$0xff]  ;;  %v244_v9 = vld [vmem:[%s235_s16 + $0x8] sm:$0xff]  ;;  %v245_v13 = vld [vmem:[%s235_s16 + $0x10] sm:$0xff]  ;;  %644 = vmatprep.subr.bf16.mxu1 %v643_v10  ;;  %v663_v27 = vpack.c.bf16 %v371_v26, %v370_v25 }
  0x31   : > { %591 = vmatprep.mubr.msk.f32.mxu0 %vm256_vm0, %v243_v2  ;;  %v246_v15 = vld [vmem:[%s235_s16 + $0x18] sm:$0xff]  ;;  %v553_v31 = vld [vmem:[%s853_s2] ss:$0 sm:$0xff] }
  0x32   : > { %592 = vmatmul.mubr.msk.f32.vlgmr.msra.gmra.mrb[0].mxu0 %vm256_vm0, %v244_v9  ;;  %v373_v29 = vld [vmem:[#allocation2 + $0x78] sm:$0xff]  ;;  %v558_v44 = vld [vmem:[%s855_s4] ss:$0 sm:$0xff] }
  0x33   : > { %594 = vmatprep.mubr.msk.f32.mxu0 %vm256_vm0, %v245_v13  ;;  %646 = vmatpush3.bf16.msra.mxu1 %v643_v10  ;;  %v667_v30 = vpack.c.bf16 %v373_v29, %v372_v28 }
  0x34   : > { %648 = vmatprep.subr.bf16.mxu1 %v647_v14 }
  0x36   : > { %595 = vmatmul.mubr.msk.f32.gmra.mrb[2].mxu0 %vm256_vm0, %v246_v15 }
  0x37   : > { %650 = vmatpush3.bf16.msra.mxu1 %v647_v14 }
  0x38   : > { %652 = vmatprep.subr.bf16.mxu1 %v651_v18 }
  0x3b   : > { %654 = vmatpush3.bf16.msra.mxu1 %v651_v18 }
  0x3c   : > { %656 = vmatprep.subr.bf16.mxu1 %v655_v21 }
  0x3f   : > { %658 = vmatpush3.bf16.msra.mxu1 %v655_v21 }
  0x40   : > { %660 = vmatprep.subr.bf16.mxu1 %v659_v24 }
  0x43   : > { %662 = vmatpush3.bf16.msra.mxu1 %v659_v24 }
  0x44   : > { %664 = vmatprep.subr.bf16.mxu1 %v663_v27 }
  0x47   : > { %666 = vmatpush3.bf16.msra.mxu1 %v663_v27 }
  0x48   : > { %668 = vmatprep.subr.bf16.mxu1 %v667_v30 }
  0x4b   : > { %670 = vmatpush3.bf16.msra.mxu1 %v667_v30 }
 0x105   : > { %v593_v32 = vpop.f32.mrb[0].mxu0 }
 0x106   : > { %v341_v33 = vadd.f32 %v593_v32, %v553_v31  ;;  %v335_v34 = vpop.f32.mrb[1].mxu0 }
 0x107   : > { %v336_v35 = vadd.f32 %v553_v31, %v335_v34 }
 0x108   : > { %v355_v38 = vmax.f32 %v341_v33, 0.0 }
 0x109   : > { %v596_v36 = vpop.f32.mrb[2].mxu0  ;;  %v354_v37 = vmax.f32 %v336_v35, 0.0 }
 0x10a   : > { %v351_v39 = vadd.f32 %v596_v36, %v553_v31  ;;  %v345_v40 = vpop.f32.mrb[3].mxu0 }
 0x10b   : > { %v346_v41 = vadd.f32 %v553_v31, %v345_v40  ;;  %629 = vmatprep.mubr.f32.mxu1 %v354_v37 }
 0x10c   : > { %630 = vmatmul.mubr.f32.vlgmr.msra.gmra.mrb[0].mxu1 %v355_v38  ;;  %v357_v43 = vmax.f32 %v351_v39, 0.0 }
 0x10d   : > { %v356_v42 = vmax.f32 %v346_v41, 0.0 }
 0x10f   : > { %632 = vmatprep.mubr.f32.mxu1 %v356_v42 }
 0x110   : > { %633 = vmatmul.mubr.f32.gmra.mrb[2].mxu1 %v357_v43 }
 0x1df   : > { %v631_v45 = vpop.f32.mrb[0].mxu1 }
 0x1e0   : > { %v453_v46 = vadd.f32 %v631_v45, %v558_v44  ;;  %v447_v47 = vpop.f32.mrb[1].mxu1 }
 0x1e1   : > { %v448_v48 = vadd.f32 %v558_v44, %v447_v47 }
 0x1e2   : > { %v467_v51 = vmax.f32 %v453_v46, 0.0 }
 0x1e3   : > { %v466_v49 = vmax.f32 %v448_v48, 0.0  ;;  %v634_v50 = vpop.f32.mrb[2].mxu1 }
 0x1e4   : > { %v463_v52 = vadd.f32 %v634_v50, %v558_v44  ;;  %v457_v53 = vpop.f32.mrb[3].mxu1  ;;  %471 = vst.msk [vmem:[%s241_s28 + $0x8] sm:$0xff] %vm256_vm0, %v467_v51 }
 0x1e5   : > { %470 = vst.msk [vmem:[%s241_s28] sm:$0xff] %vm256_vm0, %v466_v49  ;;  %v458_v54 = vadd.f32 %v558_v44, %v457_v53 }
 0x1e6   : > { %v469_v56 = vmax.f32 %v463_v52, 0.0 }
 0x1e7   : > { %v468_v55 = vmax.f32 %v458_v54, 0.0 }
 0x1e8   : > { %473 = vst.msk [vmem:[%s241_s28 + $0x18] sm:$0xff] %vm256_vm0, %v469_v56 }
 0x1e9   : > { %472 = vst.msk [vmem:[%s241_s28 + $0x10] sm:$0xff] %vm256_vm0, %v468_v55 }
 0x1ea PF: > { %s16_s18 = sadd.s32 1, %s730_s18  }
 0x1eb   : > { %p13_p3 = scmp.ge.s32.totalorder %s16_s18, 4  }
 0x1ed   :  { %15 = sbr.rel (!%p13_p3) target bundleno = 1 (0x1), region = 75 }
 0x1f4   :  { %496 = vsyncpa [#allocation3], 1 }
 0x1f5   :  { %498 = vsyncpa [#allocation3 + $0x1], 1 }

</bundles_post_ra>
